<compile_context>
chip_gen: v7x
topology: tpu7x:2x2x1
jax: 0.10.0
libtpu: 0.0.40
codegen_flags: <defaults>
</compile_context>

<pallas_src>
import functools

import jax
import jax.numpy as jnp
from jax.experimental import pallas as pl
from jax.experimental.pallas import tpu as pltpu


def _pick_tile(dim, target):
    # Full-extent block when small / not evenly divisible (always legal);
    # otherwise a lane/sublane-aligned tile (targets are multiples of 128).
    return target if (dim > target and dim % target == 0) else dim


# ----------------------------------------------------------------------------
# Tiled GEMM (+ bias) kernel — used for o_proj.
# ----------------------------------------------------------------------------
def _matmul_bias_kernel(x_ref, w_ref, b_ref, o_ref, acc_ref):
    @pl.when(pl.program_id(2) == 0)
    def _init():
        acc_ref[...] = jnp.zeros_like(acc_ref)

    acc_ref[...] += jnp.dot(
        x_ref[...], w_ref[...], preferred_element_type=jnp.float32
    )

    @pl.when(pl.program_id(2) == pl.num_programs(2) - 1)
    def _finalize():
        o_ref[...] = (acc_ref[...] + b_ref[...]).astype(o_ref.dtype)


def linear(x2d, w, b, *, out_dtype=jnp.float32, tm=256, tn=256, tk=512):
    """y = x2d @ w + b.  bf16 operands, f32 accumulation, tiled over (M, N, K)."""
    M, K = x2d.shape
    _, N = w.shape
    tm = _pick_tile(M, tm)
    tn = _pick_tile(N, tn)
    tk = _pick_tile(K, tk)
    grid = (M // tm, N // tn, K // tk)

    cost = pl.CostEstimate(
        flops=2 * M * N * K,
        transcendentals=0,
        bytes_accessed=(
            x2d.size * x2d.dtype.itemsize
            + w.size * w.dtype.itemsize
            + M * N * jnp.dtype(out_dtype).itemsize
        ),
    )

    return pl.pallas_call(
        _matmul_bias_kernel,
        out_shape=jax.ShapeDtypeStruct((M, N), out_dtype),
        grid_spec=pltpu.PrefetchScalarGridSpec(
            num_scalar_prefetch=0,
            grid=grid,
            in_specs=[
                pl.BlockSpec((tm, tk), lambda i, j, k: (i, k)),
                pl.BlockSpec((tk, tn), lambda i, j, k: (k, j)),
                pl.BlockSpec((1, tn), lambda i, j, k: (0, j)),
            ],
            out_specs=pl.BlockSpec((tm, tn), lambda i, j, k: (i, j)),
            scratch_shapes=[pltpu.VMEM((tm, tn), jnp.float32)],
        ),
        compiler_params=pltpu.CompilerParams(
            dimension_semantics=("parallel", "parallel", "arbitrary")
        ),
        cost_estimate=cost,
    )(x2d, w, b.reshape(1, N))


# ----------------------------------------------------------------------------
# Fused QKV GEMM: y[g] = x @ w3[g] + b3[g]  for g in {q, k, v}.
# Output is (3, M, HID) so the attention kernel can read q/k/v windows directly.
# ----------------------------------------------------------------------------
def _qkv_matmul_kernel(x_ref, w_ref, b_ref, o_ref, acc_ref):
    @pl.when(pl.program_id(3) == 0)
    def _init():
        acc_ref[...] = jnp.zeros_like(acc_ref)

    acc_ref[...] += jnp.dot(
        x_ref[...], w_ref[0], preferred_element_type=jnp.float32
    )

    @pl.when(pl.program_id(3) == pl.num_programs(3) - 1)
    def _finalize():
        o_ref[0] = (acc_ref[...] + b_ref[0]).astype(o_ref.dtype)


def qkv_linear(x2d, w3, b3, *, out_dtype=jnp.bfloat16, tm=256, tn=256, tk=512):
    """x2d: (M, K); w3: (3, K, N); b3: (3, 1, N) -> (3, M, N)."""
    M, K = x2d.shape
    _, _, N = w3.shape
    tm = _pick_tile(M, tm)
    tn = _pick_tile(N, tn)
    tk = _pick_tile(K, tk)
    grid = (3, M // tm, N // tn, K // tk)

    cost = pl.CostEstimate(
        flops=2 * 3 * M * N * K,
        transcendentals=0,
        bytes_accessed=(
            x2d.size * x2d.dtype.itemsize
            + w3.size * w3.dtype.itemsize
            + 3 * M * N * jnp.dtype(out_dtype).itemsize
        ),
    )

    return pl.pallas_call(
        _qkv_matmul_kernel,
        out_shape=jax.ShapeDtypeStruct((3, M, N), out_dtype),
        grid_spec=pltpu.PrefetchScalarGridSpec(
            num_scalar_prefetch=0,
            grid=grid,
            in_specs=[
                pl.BlockSpec((tm, tk), lambda g, i, j, k: (i, k)),
                pl.BlockSpec((1, tk, tn), lambda g, i, j, k: (g, k, j)),
                pl.BlockSpec((1, 1, tn), lambda g, i, j, k: (g, 0, j)),
            ],
            out_specs=pl.BlockSpec((1, tm, tn), lambda g, i, j, k: (g, i, j)),
            scratch_shapes=[pltpu.VMEM((tm, tn), jnp.float32)],
        ),
        compiler_params=pltpu.CompilerParams(
            dimension_semantics=("parallel", "parallel", "parallel", "arbitrary")
        ),
        cost_estimate=cost,
    )(x2d, w3, b3)


# ----------------------------------------------------------------------------
# Flash-style attention kernel with fused rotary embedding.
# Heads are folded into the lane dimension; within each head the channel order
# is [real parts | imag parts] (weights were permuted accordingly), so RoPE is
# the rotate-half form with contiguous lane slices.
# ----------------------------------------------------------------------------
def _flash_attn_kernel(q_ref, k_ref, v_ref, cq_ref, sq_ref, ck_ref, sk_ref,
                       mask_ref, o_ref, m_ref, l_ref, acc_ref, qrot_ref,
                       *, heads_per_block, head_dim, scale):
    kv = pl.program_id(3)
    D = head_dim
    Dh = D // 2
    tq = qrot_ref.shape[0]

    @pl.when(kv == 0)
    def _init():
        m_ref[...] = jnp.full(m_ref.shape, -jnp.inf, dtype=jnp.float32)
        l_ref[...] = jnp.zeros_like(l_ref)
        acc_ref[...] = jnp.zeros_like(acc_ref)
        # Rotate (RoPE) + pre-scale q ONCE per (b, head-block, q-tile); reused over kv.
        q = q_ref[0, 0].astype(jnp.float32)      # (tq, Hb*D)
        cq = cq_ref[...]                          # (tq, D/2)
        sq = sq_ref[...]
        for h in range(heads_per_block):          # static unroll over heads in this block
            lo = h * D
            qr = q[:, lo:lo + Dh]
            qi = q[:, lo + Dh:lo + D]
            qrot = jnp.concatenate(
                [qr * cq - qi * sq, qr * sq + qi * cq], axis=-1) * scale
            qrot_ref[:, lo:lo + D] = qrot.astype(qrot_ref.dtype)

    k = k_ref[0, 0].astype(jnp.float32)           # (tk, Hb*D)
    v = v_ref[0, 0]                               # (tk, Hb*D) bf16
    ck = ck_ref[...]                              # (tk, D/2)
    sk = sk_ref[...]
    mask = mask_ref[...]                          # (tq, tk) f32 additive

    for h in range(heads_per_block):
        lo = h * D
        hi = lo + D
        # rotate k for this head (rotate-half form; channels are [real | imag])
        kr = k[:, lo:lo + Dh]
        ki = k[:, lo + Dh:hi]
        krot = jnp.concatenate(
            [kr * ck - ki * sk, kr * sk + ki * ck], axis=-1).astype(jnp.bfloat16)

        qh = qrot_ref[:, lo:hi]                   # (tq, D) bf16, already scaled
        vh = v[:, lo:hi].astype(jnp.bfloat16)

        # q @ k^T without an explicit transpose: contract the last dim of both.
        s = jax.lax.dot_general(
            qh, krot, (((1,), (1,)), ((), ())),
            preferred_element_type=jnp.float32,
        )
        s = s + mask                                            # (tq, tk) f32

        # online softmax (all statistics kept in f32)
        m_prev = m_ref[:, lo:lo + 1]                            # (tq, 1)
        m_new = jnp.maximum(m_prev, jnp.max(s, axis=-1, keepdims=True))
        alpha = jnp.exp(m_prev - m_new)                         # (tq, 1)
        p = jnp.exp(s - m_new)                                  # (tq, tk) f32
        l_new = alpha * l_ref[:, lo:lo + 1] + jnp.sum(p, axis=-1, keepdims=True)

        pv = jnp.dot(p.astype(jnp.bfloat16), vh,
                     preferred_element_type=jnp.float32)        # (tq, D)
        acc_ref[:, lo:hi] = alpha * acc_ref[:, lo:hi] + pv
        # m / l stored broadcast across the head's D lanes so the finalize is one
        # lane-dense multiply + store over the whole head-block.
        m_ref[:, lo:hi] = jnp.broadcast_to(m_new, (tq, D))
        l_ref[:, lo:hi] = jnp.broadcast_to(l_new, (tq, D))

    @pl.when(kv == pl.num_programs(3) - 1)
    def _finalize():
        inv_l = pl.reciprocal(l_ref[...], approx=True)
        o_ref[0] = (acc_ref[...] * inv_l).astype(o_ref.dtype)


def attention_core(qkv, mask, cos, sin, head, head_dim, *,
                   tq=256, tk=256, out_dtype=jnp.bfloat16):
    """qkv: (3, B, S, head*head_dim) with per-head channels contiguous on the last
    axis and, for q/k, de-interleaved to [real | imag] within each head.
    mask: (S, S) additive.  cos/sin: (S, head_dim//2).
    Returns (B, S, head*head_dim) in out_dtype."""
    _, B, S, HID = qkv.shape
    D = head_dim
    Dh = D // 2
    # Heads per grid block: aim for a >=512-lane block when possible (lane-dense
    # output stores, per-grid-step overhead amortized over several heads).
    hb = max(1, min(head, max(1, 512 // D)))
    while head % hb != 0:
        hb -= 1
    tq = _pick_tile(S, tq)
    tk = _pick_tile(S, tk)
    grid = (B, head // hb, S // tq, S // tk)
    scale = 1.0 / float(D) ** 0.5

    kernel = functools.partial(
        _flash_attn_kernel, heads_per_block=hb, head_dim=D, scale=scale
    )
    cost = pl.CostEstimate(
        flops=4 * B * S * S * HID,
        transcendentals=B * head * S * S,
        bytes_accessed=(
            3 * B * S * HID * qkv.dtype.itemsize
            + B * S * HID * jnp.dtype(out_dtype).itemsize
            + mask.size * mask.dtype.itemsize
        ),
    )

    return pl.pallas_call(
        kernel,
        out_shape=jax.ShapeDtypeStruct((B, S, HID), out_dtype),
        grid_spec=pltpu.PrefetchScalarGridSpec(
            num_scalar_prefetch=0,
            grid=grid,
            in_specs=[
                # q / k / v are three windows of the SAME fused qkv array.
                pl.BlockSpec((1, 1, tq, hb * D), lambda b, h, qi, ki: (0, b, qi, h)),
                pl.BlockSpec((1, 1, tk, hb * D), lambda b, h, qi, ki: (1, b, ki, h)),
                pl.BlockSpec((1, 1, tk, hb * D), lambda b, h, qi, ki: (2, b, ki, h)),
                pl.BlockSpec((tq, Dh), lambda b, h, qi, ki: (qi, 0)),   # cos @ q rows
                pl.BlockSpec((tq, Dh), lambda b, h, qi, ki: (qi, 0)),   # sin @ q rows
                pl.BlockSpec((tk, Dh), lambda b, h, qi, ki: (ki, 0)),   # cos @ k rows
                pl.BlockSpec((tk, Dh), lambda b, h, qi, ki: (ki, 0)),   # sin @ k rows
                pl.BlockSpec((tq, tk), lambda b, h, qi, ki: (qi, ki)),  # additive mask
            ],
            out_specs=pl.BlockSpec(
                (1, tq, hb * D), lambda b, h, qi, ki: (b, qi, h)
            ),
            scratch_shapes=[
                pltpu.VMEM((tq, hb * D), jnp.float32),   # m (broadcast over D lanes)
                pltpu.VMEM((tq, hb * D), jnp.float32),   # l (broadcast over D lanes)
                pltpu.VMEM((tq, hb * D), jnp.float32),   # acc
                pltpu.VMEM((tq, hb * D), jnp.bfloat16),  # cached rotated+scaled q
            ],
        ),
        compiler_params=pltpu.CompilerParams(
            dimension_semantics=("parallel", "parallel", "parallel", "arbitrary")
        ),
        cost_estimate=cost,
    )(qkv, qkv, qkv, cos, sin, cos, sin, mask)


# ----------------------------------------------------------------------------
# Rotary embedding (interleaved, f32) — used only by the pure-JAX reference.
# ----------------------------------------------------------------------------
def apply_rotary_emb(xq, xk, cos, sin):
    # xq, xk: (B, S, H, D);  cos, sin: (S, D//2)
    def rot(x):
        xr = x[..., 0::2]                      # real parts
        xi = x[..., 1::2]                      # imag parts
        c = cos[None, :, None, :]
        s = sin[None, :, None, :]
        yr = xr * c - xi * s
        yi = xr * s + xi * c
        return jnp.stack([yr, yi], axis=-1).reshape(x.shape)
    return rot(xq), rot(xk)


# ----------------------------------------------------------------------------
# Full forward pass (equivalent to Attention.forward with rotary + mask)
# ----------------------------------------------------------------------------
def attention_forward(params, x, mask, cos, sin, head, head_dim):
    B, S, HID = x.shape
    x2d = x.reshape(B * S, HID).astype(jnp.bfloat16)

    # Fused QKV projection: one tiled GEMM reading x once; output (3, B*S, HID) bf16.
    qkv = qkv_linear(x2d, params["w_qkv"], params["b_qkv"], out_dtype=jnp.bfloat16)
    qkv = qkv.reshape(3, B, S, HID)              # free (contiguous) reshape

    # Attention (rotary fused in-kernel); output already in the layout o_proj wants.
    o = attention_core(qkv, mask, cos, sin, head, head_dim)     # (B, S, HID) bf16

    out = linear(o.reshape(B * S, HID), params["wo"], params["bo"],
                 out_dtype=jnp.float32)
    return out.reshape(B, S, HID)


# Pure-JAX reference (f32, no Pallas, original interleaved rotary) for validation.
def attention_reference(params, x, mask, cos, sin, head, head_dim):
    B, S, HID = x.shape
    q = x @ params["wq"] + params["bq"]
    k = x @ params["wk"] + params["bk"]
    v = x @ params["wv"] + params["bv"]
    q = q.reshape(B, S, head, head_dim)
    k = k.reshape(B, S, head, head_dim)
    v = v.reshape(B, S, head, head_dim)
    q, k = apply_rotary_emb(q, k, cos, sin)
    q = jnp.transpose(q, (0, 2, 1, 3))
    k = jnp.transpose(k, (0, 2, 1, 3))
    v = jnp.transpose(v, (0, 2, 1, 3))
    scores = jnp.einsum("bhqd,bhkd->bhqk", q, k) / jnp.sqrt(
        jnp.array(head_dim, jnp.float32)
    )
    scores = scores + mask[None, None]
    attn = jax.nn.softmax(scores.astype(jnp.float32), axis=-1)
    o = jnp.einsum("bhqk,bhkd->bhqd", attn, v)
    o = jnp.transpose(o, (0, 2, 1, 3)).reshape(B, S, HID)
    return o @ params["wo"] + params["bo"]


# ----------------------------------------------------------------------------
# Main
# ----------------------------------------------------------------------------
if __name__ == "__main__":
    head, head_dim = 4, 8
    hidden = head * head_dim            # 32
    B, S = 2, 8

    key = jax.random.PRNGKey(0)
    ks = jax.random.split(key, 10)
    wscale = 0.05
    # weights stored (in, out) == PyTorch weight.T
    params_f32 = {
        "wq": jax.random.normal(ks[0], (hidden, hidden), jnp.float32) * wscale,
        "bq": jax.random.normal(ks[1], (hidden,), jnp.float32) * wscale,
        "wk": jax.random.normal(ks[2], (hidden, hidden), jnp.float32) * wscale,
        "bk": jax.random.normal(ks[3], (hidden,), jnp.float32) * wscale,
        "wv": jax.random.normal(ks[4], (hidden, hidden), jnp.float32) * wscale,
        "bv": jax.random.normal(ks[5], (hidden,), jnp.float32) * wscale,
        "wo": jax.random.normal(ks[6], (hidden, hidden), jnp.float32) * wscale,
        "bo": jax.random.normal(ks[7], (hidden,), jnp.float32) * wscale,
    }

    # De-interleave permutation (within each head: real parts first, then imag parts).
    # Applied to q/k projection output columns so in-kernel RoPE needs no lane permutes;
    # scores are invariant to a per-head channel permutation applied to both q and k.
    perm = []
    for h in range(head):
        base = h * head_dim
        perm += [base + 2 * j for j in range(head_dim // 2)]
        perm += [base + 2 * j + 1 for j in range(head_dim // 2)]
    perm = jnp.array(perm, dtype=jnp.int32)

    # kernel-side params: stacked QKV weight (3, K, N), bf16 matmul operands, f32 biases.
    params_kernel = {
        "w_qkv": jnp.stack(
            [params_f32["wq"][:, perm], params_f32["wk"][:, perm], params_f32["wv"]],
            axis=0,
        ).astype(jnp.bfloat16),
        "b_qkv": jnp.stack(
            [params_f32["bq"][perm], params_f32["bk"][perm], params_f32["bv"]],
            axis=0,
        ).reshape(3, 1, hidden),
        "wo": params_f32["wo"].astype(jnp.bfloat16),
        "bo": params_f32["bo"],
    }

    x = jax.random.normal(ks[8], (B, S, hidden), jnp.float32)

    # causal additive mask (S, S): 0 on/below diagonal, large negative above
    neg = jnp.full((S, S), -1e9, jnp.float32)
    mask = jnp.where(jnp.tril(jnp.ones((S, S), bool)), 0.0, neg)

    # precomputed rotary frequencies (freqs_cis split into cos/sin), shape (S, D/2)
    inv_freq = 1.0 / (
        10000.0 ** (jnp.arange(0, head_dim, 2, dtype=jnp.float32) / head_dim)
    )
    angles = jnp.arange(S, dtype=jnp.float32)[:, None] * inv_freq[None, :]
    cos, sin = jnp.cos(angles), jnp.sin(angles)

    out = attention_forward(params_kernel, x, mask, cos, sin, head, head_dim)
    out = jax.block_until_ready(out)

    ref = attention_reference(params_f32, x, mask, cos, sin, head, head_dim)
    assert out.shape == (B, S, hidden)
    # bf16 MXU operands + bf16 q/k/v storage + approx reciprocal => looser tolerance.
    assert jnp.allclose(out, ref, atol=2e-2, rtol=2e-2), "mismatch vs JAX reference"

    print("KERNEL_OK")
</pallas_src>

<mosaic_0001>
module attributes {stable_mosaic.version = 11 : i64} {
  func.func @_qkv_matmul_kernel(%arg0: i32, %arg1: i32, %arg2: i32, %arg3: i32, %arg4: memref<16x32xbf16, #tpu.memory_space<vmem>>, %arg5: memref<1x32x32xbf16, #tpu.memory_space<vmem>>, %arg6: memref<1x1x32xf32, #tpu.memory_space<vmem>>, %arg7: memref<1x16x32xbf16, #tpu.memory_space<vmem>>, %arg8: memref<16x32xf32, #tpu.memory_space<vmem>>) attributes {dimension_semantics = [#tpu.dimension_semantics<parallel>, #tpu.dimension_semantics<parallel>, #tpu.dimension_semantics<parallel>, #tpu.dimension_semantics<arbitrary>], iteration_bounds = array<i64: 3, 1, 1, 1>, scalar_prefetch = 0 : i64, scratch_operands = 1 : i64, tpu.core_type = #tpu.core_type<tc>, window_params = [{transform_indices = @transform_0, window_bounds = array<i64: 16, 32>}, {transform_indices = @transform_1, window_bounds = array<i64: 1, 32, 32>}, {transform_indices = @transform_2, window_bounds = array<i64: 1, 1, 32>}, {transform_indices = @transform_3, window_bounds = array<i64: 1, 16, 32>}]} {
    %c0_i32 = arith.constant 0 : i32
    %0 = arith.cmpi eq, %arg3, %c0_i32 : i32
    %1 = arith.extui %0 : i1 to i32
    %c0_i32_0 = arith.constant 0 : i32
    %2 = arith.cmpi ne, %1, %c0_i32_0 : i32
    scf.if %2 {
      %cst_11 = arith.constant 0.000000e+00 : f32
      %13 = vector.broadcast %cst_11 : f32 to vector<16x32xf32>
      %c0_12 = arith.constant 0 : index
      %c0_13 = arith.constant 0 : index
      %14 = vector.load %arg8[%c0_12, %c0_13] : memref<16x32xf32, #tpu.memory_space<vmem>>, vector<16x32xf32>
      tpu.vector_store %arg8[%c0_12, %c0_13], %13 {strides = array<i32>} : memref<16x32xf32, #tpu.memory_space<vmem>>, vector<16x32xf32>,
    } else {
    }
    %c0 = arith.constant 0 : index
    %c0_1 = arith.constant 0 : index
    %3 = vector.load %arg8[%c0, %c0_1] : memref<16x32xf32, #tpu.memory_space<vmem>>, vector<16x32xf32>
    %c0_2 = arith.constant 0 : index
    %c0_3 = arith.constant 0 : index
    %4 = vector.load %arg4[%c0_2, %c0_3] : memref<16x32xbf16, #tpu.memory_space<vmem>>, vector<16x32xbf16>
    %c0_4 = arith.constant 0 : index
    %c0_5 = arith.constant 0 : index
    %c0_6 = arith.constant 0 : index
    %5 = vector.load %arg5[%c0_4, %c0_5, %c0_6] : memref<1x32x32xbf16, #tpu.memory_space<vmem>>, vector<1x32x32xbf16>
    %6 = vector.shape_cast %5 : vector<1x32x32xbf16> to vector<32x32xbf16>
    %cst = arith.constant dense<0.000000e+00> : vector<16x32xf32>
    %7 = tpu.matmul %4, %6, %cst {dimension_numbers = #tpu.dot_dimension_numbers<[1], [0], [0], [1], [0, 0, 1, 1], [], []>} : vector<16x32xbf16>, vector<32x32xbf16>, vector<16x32xf32> -> vector<16x32xf32>
    %8 = arith.addf %3, %7 : vector<16x32xf32>
    %c0_7 = arith.constant 0 : index
    %c0_8 = arith.constant 0 : index
    %9 = vector.load %arg8[%c0_7, %c0_8] : memref<16x32xf32, #tpu.memory_space<vmem>>, vector<16x32xf32>
    tpu.vector_store %arg8[%c0_7, %c0_8], %8 {strides = array<i32>} : memref<16x32xf32, #tpu.memory_space<vmem>>, vector<16x32xf32>,
    %c0_i32_9 = arith.constant 0 : i32
    %10 = arith.cmpi eq, %arg3, %c0_i32_9 : i32
    %11 = arith.extui %10 : i1 to i32
    %c0_i32_10 = arith.constant 0 : i32
    %12 = arith.cmpi ne, %11, %c0_i32_10 : i32
    scf.if %12 {
      %c0_11 = arith.constant 0 : index
      %c0_12 = arith.constant 0 : index
      %13 = vector.load %arg8[%c0_11, %c0_12] : memref<16x32xf32, #tpu.memory_space<vmem>>, vector<16x32xf32>
      %c0_13 = arith.constant 0 : index
      %c0_14 = arith.constant 0 : index
      %c0_15 = arith.constant 0 : index
      %14 = vector.load %arg6[%c0_13, %c0_14, %c0_15] : memref<1x1x32xf32, #tpu.memory_space<vmem>>, vector<1x1x32xf32>
      %15 = vector.shape_cast %14 : vector<1x1x32xf32> to vector<1x32xf32>
      %16 = vector.broadcast %15 : vector<1x32xf32> to vector<16x32xf32>
      %17 = arith.addf %13, %16 : vector<16x32xf32>
      %18 = arith.truncf %17 : vector<16x32xf32> to vector<16x32xbf16>
      %c0_16 = arith.constant 0 : index
      %c0_17 = arith.constant 0 : index
      %c0_18 = arith.constant 0 : index
      %19 = vector.load %arg7[%c0_16, %c0_17, %c0_18] : memref<1x16x32xbf16, #tpu.memory_space<vmem>>, vector<1x16x32xbf16>
      %20 = vector.shape_cast %19 : vector<1x16x32xbf16> to vector<16x32xbf16>
      %21 = vector.shape_cast %18 : vector<16x32xbf16> to vector<1x16x32xbf16>
      tpu.vector_store %arg7[%c0_16, %c0_17, %c0_18], %21 {strides = array<i32>} : memref<1x16x32xbf16, #tpu.memory_space<vmem>>, vector<1x16x32xbf16>,
    } else {
    }
    return
  }
  func.func @transform_0(%arg0: i32, %arg1: i32, %arg2: i32, %arg3: i32) -> (i32, i32) {
    %c0_i32 = arith.constant 0 : i32
    return %arg1, %arg3 : i32, i32
  }
  func.func @transform_1(%arg0: i32, %arg1: i32, %arg2: i32, %arg3: i32) -> (i32, i32, i32) {
    %c0_i32 = arith.constant 0 : i32
    return %arg0, %arg3, %arg2 : i32, i32, i32
  }
  func.func @transform_2(%arg0: i32, %arg1: i32, %arg2: i32, %arg3: i32) -> (i32, i32, i32) {
    %c0_i32 = arith.constant 0 : i32
    %c0_i32_0 = arith.constant 0 : i32
    return %arg0, %c0_i32, %arg2 : i32, i32, i32
  }
  func.func @transform_3(%arg0: i32, %arg1: i32, %arg2: i32, %arg3: i32) -> (i32, i32, i32) {
    %c0_i32 = arith.constant 0 : i32
    return %arg0, %arg1, %arg2 : i32, i32, i32
  }
}

</mosaic_0001>

<bundles_post_ra>
// kernel: tpu_custom_call.1
= control target key start
LH: loop header
LB: loop body
LE: loop exit
PB: predicated region body
PF: predicated region fallthrough
CT: control target
= control target key end

     0   :  { %8 = vsyncpa [#allocation4], 0  ;;  %s1057_s0 = inlined_call_operand.hbm [shape: bf16[16,32], index: 0, kind: input, shape index: {}]   ;;  %s1058_s1 = inlined_call_operand.hbm [shape: bf16[3,32,32], index: 1, kind: input, shape index: {}]   ;;  %s1059_s2 = inlined_call_operand.vmem [shape: f32[3,1,32], index: 2, kind: input, shape index: {}]   ;;  %s1060_s3 = inlined_call_operand.hbm [shape: bf16[3,16,32], index: 3, kind: output, shape index: {}]  }
   0x1   :  { %9 = vsyncpa [#allocation7], 0 }
   0x2   :  { %11 = vsyncpa [#allocation7 + $0x1], 0 }
   0x3   :  { %12 = vsyncpa [#allocation5], 0 }
   0x4   :  { %14 = vsyncpa [#allocation5 + $0x1], 0  ;;  %s823_s12 = smov 0   ;;  %s825_s13 = smov 0  }
   0x5   :  { %s827_s14 = smov 0   ;;  %s829_s15 = smov 0  }
   0x6   :  { %s831_s16 = smov 0   ;;  %s833_s17 = smov 0  }
   0x7 LB: > { %s527_s18 = sadd.s32 4294967295, %s792_s17   ;;  %s528_s19 = sadd.s32 4294967294, %s792_s17   ;;  %s792_s17 = sphi %s833_s17, %s20_s17   ;;  %s788_s16 = sphi %s831_s16, %s1083_s16   ;;  %s784_s15 = sphi %s829_s15, %s1082_s15   ;;  %s780_s14 = sphi %s827_s14, %s1081_s14   ;;  %s776_s13 = sphi %s825_s13, %s1080_s13   ;;  %s772_s12 = sphi %s823_s12, %s1079_s12  }
   0x8   : > { %p98_p0 = scmp.ne.s32.totalorder %s776_s13, %s772_s12  ;;  %p857_p1 = scmp.eq.s32.totalorder %s527_s18, 0 }
   0x9   : > { %p861_p2 = scmp.eq.s32.totalorder %s527_s18, 2  ;;  %p160_p3 = scmp.eq.s32.totalorder %s528_s19, 2 }
   0xa   : > { %s1065_s20 = scalar_select %p857_p1, 1, 0 }
   0xb   : > { %s1066_s21 = scalar_select %p861_p2, 1, 0 }
   0xc   : > { %p867_p4 = por %p857_p1, %p98_p0  ;;  %p529_p5 = scmp.ge.s32.totalorder %s792_s17, 1 }
   0xd   : > { %p872_p6 = por %p160_p3, %p98_p0  ;;  %p167_p7 = scmp.lt.s32.totalorder %s792_s17, 4 }
   0xe   : > { %s1067_s22 = scalar_select %p867_p4, 1, 0 }
   0xf   : > { %s1068_s23 = scalar_select %p872_p6, 1, 0 }
  0x10   : > { %p877_p8 = pnand %p529_p5, %p167_p7  ;;  %s794_s25 = smov [#allocation3]  }
  0x11   : > { %s183_s26 = sshll.u32 %s794_s25, 4  ;;  %s46_s28 = sadd.s32 1, %s788_s16  ;;  %s184_s26 = int_to_ptr.vmem [resolvable:$true] %s183_s26 }
  0x12   : > { %s1069_s24 = scalar_select %p877_p8, 1, 0 }
  0x13   : > { %p574_p9 = pneg %p877_p8  ;;  %s648_s4 = scalar_lea.hbm %s1057_s0, 128 }
  0x14   : > { %p649_p11 = scmp.ne.s32.totalorder %s1057_s0, %s648_s4  ;;  %p655_p3 = scmp.lt.u32.totalorder %s648_s4, %s1057_s0 }
  0x15   : > { %p885_p10 = pnand %p574_p9, %p857_p1 }
  0x17   : > { %p650_p12 = pneg %p885_p10 }
  0x19   : > { %p651_p13 = pnand %p650_p12, %p649_p11 }
  0x1b   : > { %p652_p0 = pneg %p651_p13 }
  0x1d   : > { %p657_p5 = pnand %p655_p3, %p652_p0 }
  0x1f   : > { %660 = shalt.err (!%p657_p5)
}
  0x20   : > { %s661_s9 = scalar_lea.vmem %s184_s26, 128  ;;  %p669_p4 = scmp.lt.s32.totalorder %s184_s26, %s184_s26 }
  0x21   : > { %p662_p7 = scmp.ne.s32.totalorder %s184_s26, %s661_s9  ;;  %p670_p1 = scmp.lt.s32.totalorder %s661_s9, %s661_s9 }
  0x23   : > { %p664_p9 = pnand %p662_p7, %p650_p12  ;;  %p671_p8 = por %p670_p1, %p669_p4 }
  0x25   : > { %p665_p6 = pneg %p664_p9 }
  0x27   : > { %p672_p2 = pnand %p671_p8, %p665_p6 }
  0x29   : > { %675 = shalt.err (!%p672_p2)
}
  0x2a   : > { %s795_s10 = smov 64   ;;  %s796_s11 = smov 4  }
  0x2b   : > { %577 = dma.hbm_to_vmem [thread:$0]  (!%p885_p10), %s1057_s0, 128, %s184_s26, [#allocation4], %s795_s10, %s795_s10, %s796_s11  }
  0x2c   : > { %p48_p1 = scmp.ge.s32.totalorder %s46_s28, 3  ;;  %s85_s25 = sadd.s32 1, %s780_s14 }
  0x2d   : > { %p92_p2 = scmp.ne.s32.totalorder %s780_s14, %s776_s13  ;;  %p93_p4 = scmp.eq.s32.totalorder %s792_s17, 0 }
  0x2e   : > { %s1085_s28 = smov (%p48_p1, %s46_s28), 0  ;;  %p1072_p8 = scmp.ne.s32.totalorder %s1066_s21, 0 }
  0x2f   : > { %p915_p6 = por %p93_p4, %p92_p2  ;;  %s78_s30 = ssub.s32 %s788_s16, %s1085_s28 }
  0x30   : > { %p921_p11 = por %p1072_p8, %p92_p2  ;;  %p587_p12 = scmp.lt.s32.totalorder %s792_s17, 3 }
  0x31   : > { %p83_p10 = scmp.eq.s32.totalorder %s78_s30, 0  ;;  %s197_s26 = sand.u32 1, %s780_s14  }
  0x32   : > { %s532_s4 = sshll.u32 %s197_s26, 4  ;;  %s551_s6 = sshll.u32 %s788_s16, 8 }
  0x33   : > { %s930_s5 = scalar_select %p83_p10, %s780_s14, %s85_s25  }
  0x34   : > { %s936_s9 = scalar_lea.hbm %s1058_s1, %s551_s6  ;;  %s201_s21 = scalar_lea.vmem [#allocation6], %s532_s4 }
  0x35   : > { %s211_s18 = sshll.u32 %s201_s21, 4  ;;  %p942_p13 = pnand %p587_p12, %p915_p6  ;;  %s938_s18 = int_to_ptr.vmem [resolvable:$true] %s211_s18 }
  0x36   : > { %s946_s25 = scalar_lea.sflag [#allocation7], %s197_s26  ;;  %s676_s30 = scalar_lea.hbm %s936_s9, 256 }
  0x37   : > { %p677_p0 = scmp.ne.s32.totalorder %s936_s9, %s676_s30  ;;  %p678_p3 = pneg %p942_p13 }
  0x38   : > { %s681_s29 = scalar_lea.hbm %s1058_s1, 768  ;;  %p682_p9 = scmp.lt.u32.totalorder %s936_s9, %s1058_s1 }
  0x39   : > { %p679_p5 = pnand %p678_p3, %p677_p0  ;;  %p683_p1 = scmp.lt.u32.totalorder %s681_s29, %s676_s30 }
  0x3a   : > { %p685_p4 = scmp.lt.u32.totalorder %s676_s30, %s936_s9 }
  0x3b   : > { %p680_p7 = pneg %p679_p5  ;;  %p684_p2 = por %p683_p1, %p682_p9 }
  0x3d   : > { %p686_p6 = por %p685_p4, %p684_p2 }
  0x3f   : > { %p687_p8 = pnand %p686_p6, %p680_p7 }
  0x41   : > { %690 = shalt.err (!%p687_p8)
}
  0x42   : > { %s691_s26 = scalar_lea.vmem %s938_s18, 256  ;;  %s797_s21 = smov [#allocation6]  }
  0x43   : > { %p692_p12 = scmp.ne.s32.totalorder %s938_s18, %s691_s26  ;;  %s696_s4 = sshll.u32 %s797_s21, 4  ;;  %s697_s4 = int_to_ptr.vmem [resolvable:$false] %s696_s4 }
  0x44   : > { %s698_s6 = scalar_lea.vmem %s697_s4, 512  ;;  %p699_p5 = scmp.lt.s32.totalorder %s938_s18, %s697_s4 }
  0x45   : > { %p694_p10 = pnand %p692_p12, %p678_p3  ;;  %p700_p9 = scmp.lt.s32.totalorder %s698_s6, %s691_s26 }
  0x47   : > { %p695_p0 = pneg %p694_p10  ;;  %p701_p1 = por %p700_p9, %p699_p5 }
  0x49   : > { %p702_p2 = pnand %p701_p1, %p695_p0 }
  0x4b   : > { %705 = shalt.err (!%p702_p2)
}
  0x4c   : > { %581 = dma.hbm_to_vmem [thread:$0]  (!%p942_p13), %s936_s9, 256, %s938_s18, %s946_s25, %s795_s10, %s795_s10, %s796_s11  }
  0x4d   : > { %p1075_p3 = scmp.ne.s32.totalorder %s1069_s24, 0 }
  0x4e   : > { %p1076_p7 = scmp.ne.s32.totalorder (!%p1075_p3), %s1065_s20, 0 }
  0x4f   : > { %232 = sbr.rel (%p1075_p3) target bundleno = 343 (0x157), region = 32 }
  0x56   : > { %759 = dma.done.wait (%p1076_p7), [#allocation4], 128  }
  0x57   : > { %761 = vsyncadd (%p1076_p7), [#allocation4], 4294967168  ;;  %s984_s30 = sand.u32 1, %s776_s13   ;;  %p1077_p4 = scmp.ne.s32.totalorder %s1067_s22, 0 }
  0x58   : > { %s537_s19 = sshll.u32 %s984_s30, 4  ;;  %s239_s29 = scalar_lea.sflag [#allocation7], %s984_s30 }
  0x59   : > { %s242_s7 = scalar_lea.vmem [#allocation6], %s537_s19 }
  0x5a   : > { %763 = dma.done.wait (%p1077_p4), %s239_s29, 256  }
  0x5b   : > { %765 = vsyncadd (%p1077_p4), %s239_s29, 4294967040  ;;  %vm285_vm0 = vcmask 261120   ;;  %v798_v0 = vmov 0.0   ;;  %vm799_vm1 = vmmov 0   ;;  %v645_v1 = vld [vmem:[%s242_s7] sm:$0xff]   ;;  %v646_v2 = vld [vmem:[%s242_s7 + $0x8] sm:$0xff]  }
  0x5c   : > { %558 = vmatprep.subr.bf16.mxu0 %v798_v0  ;;  %562 = vmatprep.mubr.msk.bf16.mxu0 %vm799_vm1, %v798_v0  ;;  %286 = vst.msk [vmem:[#allocation2] sm:$0xff] %vm285_vm0, %v798_v0  ;;  %287 = vst.msk [vmem:[#allocation2 + $0x8] sm:$0xff] %vm285_vm0, %v798_v0  ;;  %v647_v3 = vld [vmem:[#allocation3] sm:$0xff]   ;;  %p273_p13 = scmp.lt.s32.totalorder %s784_s15, 2  ;;  %s538_s22 = sshll.u32 %s984_s30, 3  ;;  %vm384_vm2 = vcmask 257024  }
  0x5d   : > { %559 = vmatpush3.bf16.msra.mxu0 %v645_v1  ;;  %s554_s9 = sshll.u32 %s784_s15, 7  ;;  %s270_s18 = scalar_lea.vmem [#allocation8], %s538_s22 }
  0x5e   : > { %560 = vmatprep.subr.bf16.mxu0 %v798_v0  ;;  %s274_s20 = scalar_select %p273_p13, %s784_s15, 2 }
  0x5f   : > { %s404_s25 = sshll.u32 %s270_s18, 4  ;;  %s1007_s21 = scalar_lea.hbm %s1060_s3, %s554_s9  ;;  %s1009_s25 = int_to_ptr.vmem [resolvable:$true] %s404_s25 }
  0x60   : > { %s278_s11 = scalar_lea.vmem %s1059_s2, %s274_s20  ;;  %s388_s15 = scalar_lea.sflag [#allocation5], %s984_s30 }
  0x61   : > { %561 = vmatpush3.bf16.msra.mxu0 %v646_v2  ;;  %v543_v12 = vld [vmem:[%s278_s11] ss:$0 sm:$0xff]  ;;  %s706_s4 = scalar_lea.vmem %s1009_s25, 128  ;;  %s800_s6 = smov [#allocation8]  }
  0x62   : > { %p707_p6 = scmp.ne.s32.totalorder %s1009_s25, %s706_s4  ;;  %s710_s19 = sshll.u32 %s800_s6, 4  ;;  %s711_s19 = int_to_ptr.vmem [resolvable:$false] %s710_s19 }
  0x63   : > { %v288_v4 = vld [vmem:[#allocation2] sm:$0xff]  ;;  %v289_v6 = vld [vmem:[#allocation2 + $0x8] sm:$0xff]  ;;  %s712_s29 = scalar_lea.vmem %s711_s19, 256  ;;  %p713_p10 = scmp.lt.s32.totalorder %s1009_s25, %s711_s19 }
  0x64   : > { %563 = vmatmul.mubr.msk.bf16.vlgmr.msra.gmra.mrb[0].mxu0 %vm285_vm0, %v647_v3  ;;  %p708_p8 = pnand %p707_p6, %p921_p11  ;;  %p714_p0 = scmp.lt.s32.totalorder %s712_s29, %s706_s4 }
  0x66   : > { %p709_p12 = pneg %p708_p8  ;;  %p715_p5 = por %p714_p0, %p713_p10 }
  0x68   : > { %p716_p9 = pnand %p715_p5, %p709_p12 }
 0x137   : > { %v351_v5 = vpop.f32.mrb[0].mxu0 }
 0x138   : > { %v358_v7 = vadd.f32 %v351_v5, %v288_v4  ;;  %v564_v8 = vpop.f32.mrb[1].mxu0 }
 0x139   : > { %v354_v9 = vpop.f32.mrb[2].mxu0 }
 0x13a   : > { %360 = vst.msk [vmem:[#allocation2] sm:$0xff] %vm285_vm0, %v358_v7  ;;  %v359_v10 = vadd.f32 %v354_v9, %v289_v6  ;;  %v565_v11 = vpop.f32.mrb[3].mxu0 }
 0x13c   : > { %361 = vst.msk [vmem:[#allocation2 + $0x8] sm:$0xff] %vm285_vm0, %v359_v10 }
 0x141   : > { %v365_v13 = vld [vmem:[#allocation2] sm:$0xff] }
 0x142   : > { %v374_v14 = vadd.f32 %v543_v12, %v365_v13 }
 0x143   : > { %v366_v15 = vld [vmem:[#allocation2 + $0x8] sm:$0xff] }
 0x144   : > { %v375_v16 = vadd.f32 %v543_v12, %v366_v15  ;;  %v552_v17 = vpack.c.bf16 %v374_v14, %v374_v14 }
 0x146   : > { %v553_v18 = vpack.c.bf16 %v375_v16, %v375_v16  ;;  %385 = vst.msk [vmem:[%s270_s18] sm:$0xf] %vm384_vm2, %v552_v17 }
 0x148   : > { %386 = vst.msk [vmem:[%s270_s18 + $0x4] sm:$0xf] %vm384_vm2, %v553_v18 }
 0x149   : > { %719 = shalt.err (!%p716_p9)
}
 0x14a   : > { %s720_s7 = scalar_lea.hbm %s1007_s21, 128  ;;  %s724_s24 = scalar_lea.hbm %s1060_s3, 384 }
 0x14b   : > { %p721_p1 = scmp.ne.s32.totalorder %s1007_s21, %s720_s7  ;;  %p725_p7 = scmp.lt.u32.totalorder %s1007_s21, %s1060_s3 }
 0x14c   : > { %p726_p4 = scmp.lt.u32.totalorder %s724_s24, %s720_s7  ;;  %p728_p6 = scmp.lt.u32.totalorder %s720_s7, %s1007_s21 }
 0x14d   : > { %p722_p2 = pnand %p721_p1, %p921_p11 }
 0x14e   : > { %p727_p13 = por %p726_p4, %p725_p7 }
 0x14f   : > { %p723_p3 = pneg %p722_p2 }
 0x150   : > { %p729_p8 = por %p728_p6, %p727_p13 }
 0x152   : > { %p730_p12 = pnand %p729_p8, %p723_p3 }
 0x154   : > { %733 = shalt.err (!%p730_p12)
}
 0x155   : > { %s801_s9 = smov 64   ;;  %s802_s18 = smov 4  }
 0x156   : > { %572 = dma.vmem_to_hbm [thread:$0]  (%p921_p11), %s1009_s25, 128, %s1007_s21, %s388_s15, %s801_s9, %s801_s9, %s802_s18  }
 0x157 PF: > { %p589_p10 = scmp.ge.s32.totalorder %s792_s17, 2  ;;  %s419_s8 = sand.u32 1, %s772_s12  }
 0x158   : > { %p1078_p0 = scmp.ne.s32.totalorder %s1068_s23, 0  ;;  %s420_s26 = scalar_lea.sflag [#allocation5], %s419_s8 }
 0x15a   : > { %p583_p5 = pnand %p589_p10, %p1078_p0 }
 0x15c   : > { %767 = dma.done.wait (!%p583_p5), %s420_s26, 128  }
 0x15d   : > { %769 = vsyncadd (!%p583_p5), %s420_s26, 4294967168  ;;  %s20_s17 = sadd.s32 1, %s792_s17   ;;  %s1079_s12 = smov %s776_s13 }
 0x15e   : > { %p17_p9 = scmp.ge.s32.totalorder %s20_s17, 5   ;;  %s1080_s13 = smov %s780_s14 }
 0x15f   : > { %s1081_s14 = smov %s930_s5  ;;  %s1082_s15 = smov %s788_s16 }
 0x160   : > { %s1083_s16 = smov %s1085_s28  ;;  %19 = sbr.rel (!%p17_p9) target bundleno = 7 (0x7), region = 94 }
 0x167   :  { %425 = vsyncpa [#allocation4], 1 }
 0x168   :  { %427 = vsyncpa [#allocation4 + $0x1], 1 }
 0x169   :  { %428 = vsyncpa [#allocation7], 1 }
 0x16a   :  { %430 = vsyncpa [#allocation7 + $0x1], 1 }
 0x16b   :  { %431 = vsyncpa [#allocation5], 1 }
 0x16c   :  { %433 = vsyncpa [#allocation5 + $0x1], 1 }

</bundles_post_ra>
